<compile_context>
chip_gen: v6e
topology: v6e:2x2x1
jax: 0.10.0
libtpu: 0.0.40
codegen_flags: <defaults>
</compile_context>

<pallas_src>
import functools
import math

import jax
import jax.numpy as jnp
import numpy as np
from jax.experimental import pallas as pl
from jax.experimental.pallas import tpu as pltpu


_MAX_ROW_TILE = 1024   # rows per block (f32: 1024 x 512 x 4B = 2 MiB per input block)
_MAX_FANIN = 8         # inputs reduced per pallas_call (keeps blocks large for big K)


def _cdiv(a, b):
    return -(-a // b)


def _round_up(a, b):
    return _cdiv(a, b) * b


def _sublane(itemsize):
    # Native second-minor packing: (8,128) f32, (16,128) bf16, (32,128) int8/fp8.
    return {4: 8, 2: 16, 1: 32}.get(int(itemsize), 8)


@functools.lru_cache(maxsize=None)
def _vmem_caps():
    """(double-buffered working-set budget, hard vmem_limit ceiling) in bytes."""
    try:
        cap = int(pltpu.get_tpu_info().vmem_capacity_bytes)
    except Exception:
        cap = 0
    if cap <= 0:
        cap = 64 * 1024 * 1024          # conservative default (v7x per-TC VMEM)
    ws_budget = min(cap // 2, 30 * 1024 * 1024)          # headroom for compiler scratch
    hard_limit = min(max(cap - (8 << 20), 16 << 20), 100 << 20)
    return ws_budget, hard_limit


def _choose_layout(shape, total):
    """Pick a (rows, lanes) 2-D view of the flattened array that is a *free*
    (contiguous) reshape.  Prefer a lane-dense 512/256/128-wide layout; otherwise
    keep the original trailing dim as the lane axis (lane-masked stores, but
    still one HBM pass with no pad/copy)."""
    for lanes in (512, 256, 128):
        if total % lanes == 0:
            return total // lanes, lanes
    last = shape[-1] if len(shape) else 1
    if last > 0:
        return total // last, last
    return 1, total


def _pick_row_tile(num_refs, rows, lanes, itemsize):
    """Largest row tile fitting the double-buffered VMEM budget; >=2 grid steps
    when the array is big enough (v7x megacore); exact division preferred."""
    sub = _sublane(itemsize)
    ws_budget, _ = _vmem_caps()
    per_row = 2 * num_refs * _round_up(lanes, 128) * itemsize    # double-buffered
    cap = max(sub, min(_MAX_ROW_TILE, (ws_budget // per_row) // sub * sub))
    if rows <= cap:
        if rows >= 2 * sub:
            # Split into (at least) 2 steps so both v7x TensorCores get a share.
            tr = _round_up(_cdiv(rows, 2), sub)
        else:
            tr = rows                     # tiny array: one full-extent block
    else:
        tr = cap
        # Prefer a tile (>= cap // 2) dividing rows exactly so the boundary
        # block isn't masked; otherwise Pallas masks the last block.
        t = cap
        while t >= max(sub, cap // 2):
            if rows % t == 0:
                tr = t
                break
            t -= sub
    return tr, sub


def _basic_reduce_kernel(*refs, is_add):
    # refs = (in_0, ..., in_{K-1}, out); every block is (tr, lanes).
    *in_refs, o_ref = refs
    acc = in_refs[0][...]
    for r in in_refs[1:]:
        acc = acc + r[...] if is_add else acc * r[...]
    o_ref[...] = acc


def _pallas_reduce_2d(xs2d, is_add):
    """One fused K-way elementwise reduction over identically shaped 2-D arrays."""
    rows, lanes = xs2d[0].shape
    dtype = xs2d[0].dtype
    itemsize = dtype.itemsize
    num_refs = len(xs2d) + 1                       # inputs + output
    tr, sub = _pick_row_tile(num_refs, rows, lanes, itemsize)
    grid = (_cdiv(rows, tr),)
    spec = pl.BlockSpec((tr, lanes), lambda i: (i, 0))

    _, hard_limit = _vmem_caps()
    ws = 2 * num_refs * _round_up(tr, sub) * _round_up(lanes, 128) * itemsize
    vmem_limit = int(min(max(ws + (2 << 20), 16 << 20), hard_limit))

    return pl.pallas_call(
        functools.partial(_basic_reduce_kernel, is_add=is_add),
        out_shape=jax.ShapeDtypeStruct((rows, lanes), dtype),
        grid=grid,
        in_specs=[spec] * len(xs2d),
        out_specs=spec,
        compiler_params=pltpu.CompilerParams(
            # Single grid axis; "parallel" lets v7x shard the steps over its 2 TCs.
            dimension_semantics=("parallel",),
            vmem_limit_bytes=vmem_limit,
        ),
    )(*xs2d)


def basic_forward(inputs, btype="add", params=None):
    """Pallas port of basic.forward."""
    if btype == "expand":
        # TODO(synk): torch .expand() is a zero-copy broadcast view -- there is no
        # compute to express as a Pallas kernel, so emulate it with a broadcast.
        sizes = list(params["size"]) if isinstance(params, dict) else list(params)
        x = jnp.asarray(inputs)
        off = len(sizes) - x.ndim
        full = tuple(
            x.shape[i - off] if (s == -1 and i >= off) else s
            for i, s in enumerate(sizes)
        )
        return jnp.broadcast_to(x, full)

    assert btype in ("add", "mult"), btype
    is_add = btype == "add"
    xs = [jnp.asarray(x) for x in inputs]
    shape, dtype = xs[0].shape, xs[0].dtype
    for x in xs:
        # TODO(synk): torch's += / *= would broadcast & type-promote; we require
        # identical shapes/dtypes (the usual patchwork usage).
        assert x.shape == shape and x.dtype == dtype
    if len(xs) == 1:
        return xs[0]

    total = int(math.prod(shape)) if shape else 1
    rows, lanes = _choose_layout(shape, total)
    itemsize = dtype.itemsize
    sub = _sublane(itemsize)
    _, hard_limit = _vmem_caps()

    # Rare fallback: total not a multiple of 128 *and* trailing dim too wide for
    # even a single (sub, lanes) block -> pad to a tileable lane-dense shape
    # (one extra pass; only huge ragged 1-D-ish data ever hits this).
    min_ws = (2 * (min(len(xs), _MAX_FANIN) + 1)
              * sub * _round_up(lanes, 128) * itemsize)
    use_pad = min_ws + (2 << 20) > hard_limit
    if use_pad:
        lanes = 512
        rows = _round_up(_cdiv(total, lanes), sub)

    def to2d(x):
        flat = x.reshape(-1)                       # free (contiguous) reshape
        if use_pad:
            flat = jnp.pad(flat, (0, rows * lanes - total))
        return flat.reshape(rows, lanes)

    arrs = [to2d(x) for x in xs]
    # Reduce at most _MAX_FANIN arrays per pallas_call so per-input blocks stay
    # large even at big K; only the (few) partial results are re-read.
    while len(arrs) > 1:
        nxt = []
        for i in range(0, len(arrs), _MAX_FANIN):
            chunk = arrs[i:i + _MAX_FANIN]
            nxt.append(chunk[0] if len(chunk) == 1
                       else _pallas_reduce_2d(chunk, is_add))
        arrs = nxt

    out_flat = arrs[0].reshape(-1)
    if use_pad:
        out_flat = out_flat[:total]
    return out_flat.reshape(shape)


def basic_reference(inputs, btype="add"):
    y = inputs[0]
    for x in inputs[1:]:
        y = y + x if btype == "add" else y * x
    return y


if __name__ == "__main__":
    key = jax.random.PRNGKey(0)

    def make(shape, n, dtype=jnp.float32):
        ks = jax.random.split(key, n)
        return [jax.random.normal(ks[i], shape, dtype=dtype) for i in range(n)]

    # 1) Original small case: batch=2, channels=4, spatial=16x16 (lane-dense, 1 step).
    xs = make((2, 4, 16, 16), 3)
    out = jax.block_until_ready(basic_forward(xs, btype="add"))
    np.testing.assert_allclose(np.asarray(out), np.asarray(basic_reference(xs, "add")),
                               rtol=1e-6, atol=1e-6)
    out = jax.block_until_ready(basic_forward(xs, btype="mult"))
    np.testing.assert_allclose(np.asarray(out), np.asarray(basic_reference(xs, "mult")),
                               rtol=1e-6, atol=1e-6)

    # 2) Multi-step grid (rows=128 -> 2 parallel steps, exact division).
    xs = make((8, 8, 32, 32), 3)
    out = jax.block_until_ready(basic_forward(xs, btype="add"))
    np.testing.assert_allclose(np.asarray(out), np.asarray(basic_reference(xs, "add")),
                               rtol=1e-6, atol=1e-6)

    # 3) Ragged row count (rows=20 -> masked boundary block, no host-side pad/slice).
    xs = make((5, 4, 16, 32), 3)
    out = jax.block_until_ready(basic_forward(xs, btype="mult"))
    np.testing.assert_allclose(np.asarray(out), np.asarray(basic_reference(xs, "mult")),
                               rtol=1e-6, atol=1e-6)

    # 4) bf16 (dtype-aware (16,128) packing / itemsize-aware VMEM sizing).
    xs = make((2, 4, 16, 16), 3, dtype=jnp.bfloat16)
    out = jax.block_until_ready(basic_forward(xs, btype="add"))
    np.testing.assert_allclose(np.asarray(out.astype(jnp.float32)),
                               np.asarray(basic_reference(xs, "add").astype(jnp.float32)),
                               rtol=2e-2, atol=2e-2)

    print("KERNEL_OK")
</pallas_src>

<mosaic_0001>
module attributes {stable_mosaic.version = 11 : i64} {
  func.func @_basic_reduce_kernel(%arg0: i32, %arg1: memref<4x512xf32, #tpu.memory_space<vmem>>, %arg2: memref<4x512xf32, #tpu.memory_space<vmem>>, %arg3: memref<4x512xf32, #tpu.memory_space<vmem>>, %arg4: memref<4x512xf32, #tpu.memory_space<vmem>>) attributes {dimension_semantics = [#tpu.dimension_semantics<parallel>], iteration_bounds = array<i64: 1>, scalar_prefetch = 0 : i64, scratch_operands = 0 : i64, tpu.core_type = #tpu.core_type<tc>, window_params = [{transform_indices = @transform_0, window_bounds = array<i64: 4, 512>}, {transform_indices = @transform_1, window_bounds = array<i64: 4, 512>}, {transform_indices = @transform_2, window_bounds = array<i64: 4, 512>}, {transform_indices = @transform_3, window_bounds = array<i64: 4, 512>}]} {
    %c0 = arith.constant 0 : index
    %c0_0 = arith.constant 0 : index
    %0 = vector.load %arg1[%c0, %c0_0] : memref<4x512xf32, #tpu.memory_space<vmem>>, vector<4x512xf32>
    %c0_1 = arith.constant 0 : index
    %c0_2 = arith.constant 0 : index
    %1 = vector.load %arg2[%c0_1, %c0_2] : memref<4x512xf32, #tpu.memory_space<vmem>>, vector<4x512xf32>
    %2 = arith.addf %0, %1 : vector<4x512xf32>
    %c0_3 = arith.constant 0 : index
    %c0_4 = arith.constant 0 : index
    %3 = vector.load %arg3[%c0_3, %c0_4] : memref<4x512xf32, #tpu.memory_space<vmem>>, vector<4x512xf32>
    %4 = arith.addf %2, %3 : vector<4x512xf32>
    %c0_5 = arith.constant 0 : index
    %c0_6 = arith.constant 0 : index
    %5 = vector.load %arg4[%c0_5, %c0_6] : memref<4x512xf32, #tpu.memory_space<vmem>>, vector<4x512xf32>
    tpu.vector_store %arg4[%c0_5, %c0_6], %4 {strides = array<i32>} : memref<4x512xf32, #tpu.memory_space<vmem>>, vector<4x512xf32>,
    return
  }
  func.func @transform_0(%arg0: i32) -> (i32, i32) {
    %c0_i32 = arith.constant 0 : i32
    %c0_i32_0 = arith.constant 0 : i32
    return %arg0, %c0_i32 : i32, i32
  }
  func.func @transform_1(%arg0: i32) -> (i32, i32) {
    %c0_i32 = arith.constant 0 : i32
    %c0_i32_0 = arith.constant 0 : i32
    return %arg0, %c0_i32 : i32, i32
  }
  func.func @transform_2(%arg0: i32) -> (i32, i32) {
    %c0_i32 = arith.constant 0 : i32
    %c0_i32_0 = arith.constant 0 : i32
    return %arg0, %c0_i32 : i32, i32
  }
  func.func @transform_3(%arg0: i32) -> (i32, i32) {
    %c0_i32 = arith.constant 0 : i32
    %c0_i32_0 = arith.constant 0 : i32
    return %arg0, %c0_i32 : i32, i32
  }
}

</mosaic_0001>

<bundles_post_ra>
// kernel: tpu_custom_call.1
= control target key start
LH: loop header
LB: loop body
LE: loop exit
PB: predicated region body
PF: predicated region fallthrough
CT: control target
= control target key end

     0   :  { %8 = vsyncpa [#allocation3], 0  ;;  %s204_s0 = inlined_call_operand.hbm [shape: f32[4,512], index: 0, kind: input, shape index: {}]   ;;  %s205_s1 = inlined_call_operand.hbm [shape: f32[4,512], index: 1, kind: input, shape index: {}]   ;;  %s206_s2 = inlined_call_operand.hbm [shape: f32[4,512], index: 2, kind: input, shape index: {}]   ;;  %s207_s3 = inlined_call_operand.hbm [shape: f32[4,512], index: 3, kind: output, shape index: {}]  }
   0x1   :  { %9 = vsyncpa [#allocation6], 0 }
   0x2   :  { %10 = vsyncpa [#allocation4], 0  ;;  %s168_s12 = smov [#allocation5]   ;;  %s169_s14 = smov [#allocation2]  }
   0x3   :  { %s27_s13 = sshll.u32 %s168_s12, 4  ;;  %s17_s15 = sshll.u32 %s169_s14, 4  ;;  %s28_s13 = int_to_ptr.vmem [resolvable:$true] %s27_s13  ;;  %s18_s15 = int_to_ptr.vmem [resolvable:$true] %s17_s15 }
   0x4   :  { %s90_s16 = scalar_lea.vmem %s28_s13, 256  ;;  %p95_p1 = scmp.lt.s32.totalorder %s28_s13, %s28_s13 }
   0x5   :  { %p91_p0 = scmp.ne.s32.totalorder %s28_s13, %s90_s16  ;;  %p96_p2 = scmp.lt.s32.totalorder %s90_s16, %s90_s16 }
   0x7   :  { %p97_p3 = por %p96_p2, %p95_p1 }
   0x9   :  { %p98_p4 = pnand %p97_p3, %p91_p0 }
   0xb   :  { %101 = shalt.err (!%p98_p4)
}
   0xc   :  { %30 = dma.hbm_to_vmem [thread:$0]  %s205_s1, 256, %s28_s13, [#allocation6]  }
   0xd   :  { %s110_s19 = scalar_lea.vmem %s18_s15, 256  ;;  %p115_p6 = scmp.lt.s32.totalorder %s18_s15, %s18_s15 }
   0xe   :  { %p111_p5 = scmp.ne.s32.totalorder %s18_s15, %s110_s19  ;;  %p116_p7 = scmp.lt.s32.totalorder %s110_s19, %s110_s19 }
  0x10   :  { %p117_p8 = por %p116_p7, %p115_p6 }
  0x12   :  { %p118_p9 = pnand %p117_p8, %p111_p5 }
  0x14   :  { %121 = shalt.err (!%p118_p9)
}
  0x15   :  { %20 = dma.hbm_to_vmem [thread:$0]  %s204_s0, 256, %s18_s15, [#allocation3]  }
  0x16   :  { %s170_s22 = smov [#allocation7]  }
  0x17   :  { %s37_s23 = sshll.u32 %s170_s22, 4  ;;  %s38_s23 = int_to_ptr.vmem [resolvable:$true] %s37_s23 }
  0x18   :  { %s130_s24 = scalar_lea.vmem %s38_s23, 256  ;;  %p135_p11 = scmp.lt.s32.totalorder %s38_s23, %s38_s23 }
  0x19   :  { %p131_p10 = scmp.ne.s32.totalorder %s38_s23, %s130_s24  ;;  %p136_p12 = scmp.lt.s32.totalorder %s130_s24, %s130_s24 }
  0x1b   :  { %p137_p13 = por %p136_p12, %p135_p11 }
  0x1d   :  { %p138_p0 = pnand %p137_p13, %p131_p10 }
  0x1f   :  { %141 = shalt.err (!%p138_p0)
}
  0x20   :  { %40 = dma.hbm_to_vmem [thread:$0]  %s206_s2, 256, %s38_s23, [#allocation6]  }
  0x21   :  { %162 = dma.done.wait [#allocation3], 256  }
  0x22   :  { %163 = vsyncadd [#allocation3], 4294967040 }
  0x23   :  { %164 = dma.done.wait [#allocation6], 512  }
  0x24   :  { %165 = vsyncadd [#allocation6], 4294966784  ;;  %v50_v0 = vld [vmem:[#allocation2] sm:$0xff]  ;;  %v52_v1 = vld [vmem:[#allocation5] sm:$0xff]  ;;  %s171_s0 = smov [#allocation8]  }
  0x25   :  { %v56_v2 = vld [vmem:[#allocation7] sm:$0xff]  ;;  %v54_v3 = vadd.f32 %v52_v1, %v50_v0  ;;  %v51_v4 = vld [vmem:[#allocation2 + $0x8] sm:$0xff]  ;;  %v53_v5 = vld [vmem:[#allocation5 + $0x8] sm:$0xff]  ;;  %s68_s26 = sshll.u32 %s171_s0, 4  ;;  %s69_s26 = int_to_ptr.vmem [resolvable:$true] %s68_s26 }
  0x26   :  { %v57_v6 = vld [vmem:[#allocation7 + $0x8] sm:$0xff]  ;;  %v55_v7 = vadd.f32 %v53_v5, %v51_v4  ;;  %s142_s2 = scalar_lea.vmem %s69_s26, 256  ;;  %p147_p2 = scmp.lt.s32.totalorder %s69_s26, %s69_s26 }
  0x27   :  { %v58_v8 = vadd.f32 %v56_v2, %v54_v3  ;;  %p143_p1 = scmp.ne.s32.totalorder %s69_s26, %s142_s2  ;;  %p148_p3 = scmp.lt.s32.totalorder %s142_s2, %s142_s2 }
  0x28   :  { %v59_v9 = vadd.f32 %v57_v6, %v55_v7 }
  0x29   :  { %60 = vst [vmem:[#allocation8] sm:$0xff] %v58_v8  ;;  %p149_p4 = por %p148_p3, %p147_p2 }
  0x2a   :  { %61 = vst [vmem:[#allocation8 + $0x8] sm:$0xff] %v59_v9 }
  0x2b   :  { %p150_p5 = pnand %p149_p4, %p143_p1 }
  0x2d   :  { %153 = shalt.err (!%p150_p5)
}
  0x2e   :  { %71 = dma.vmem_to_hbm [thread:$0]  %s69_s26, 256, %s207_s3, [#allocation4]  }
  0x2f   :  { %166 = dma.done.wait [#allocation4], 256  }
  0x30   :  { %167 = vsyncadd [#allocation4], 4294967040 }
  0x31   :  { %75 = vsyncpa [#allocation3], 1 }
  0x32   :  { %76 = vsyncpa [#allocation6], 1 }
  0x33   :  { %77 = vsyncpa [#allocation4], 1 }

</bundles_post_ra>
